<compile_context>
chip_gen: v5e
topology: v5e:2x2
jax: 0.10.0
libtpu: 0.0.40
codegen_flags: <defaults>
</compile_context>

<pallas_src>
from typing import Any, NamedTuple

import jax
import jax.numpy as jnp
from jax.experimental import pallas as pl
from jax.experimental.pallas import tpu as pltpu

_LANE = 128


def _round_up(a: int, m: int) -> int:
    return ((a + m - 1) // m) * m


# --------------------------- hardware parameters ---------------------------

def _hw_params():
    """Generation-dependent caps derived from VMEM capacity."""
    try:
        vmem_cap = int(pltpu.get_tpu_info().vmem_capacity_bytes)
    except Exception:
        vmem_cap = 64 * 1024 * 1024          # conservative (v7x-sized) fallback
    small_vmem = vmem_cap <= 64 * 1024 * 1024  # v7x-like: 64 MiB/TC, 2 TCs/chip
    vmem_limit = max(32 * 1024 * 1024,
                     min(vmem_cap * 3 // 4, 100 * 1024 * 1024))
    return dict(
        vmem_cap=vmem_cap,
        vmem_limit=int(vmem_limit),
        m_cap=1024 if small_vmem else 2048,      # rows (Bt*tS) per program
        tn_cap=1024 if small_vmem else 2048,     # output-feature tile
        tk_cap=512 if small_vmem else 1024,      # reduction tile
        extra_in_buffers=not small_vmem,         # Buffered(3) only with headroom
        want_multi_block=small_vmem,             # keep 2 TensorCores fed on v7x
    )


# -------------------------------- kernels ----------------------------------

def _squash_kernel_acc(x_ref, wT_ref, b_ref, g_ref, o_ref, acc_ref):
    # grid = (b_tiles, s_tiles, n_tiles, k_tiles); K innermost ("arbitrary").
    k = pl.program_id(3)

    @pl.when(k == 0)
    def _init():
        acc_ref[...] = jnp.zeros_like(acc_ref)

    Bt, tS, tK = x_ref.shape
    # Collapse (Bt, tS) -> rows so the MXU sees Bt*tS rows per pass.
    x2 = x_ref[...].reshape(Bt * tS, tK)
    acc_ref[...] += jnp.dot(x2, wT_ref[...], preferred_element_type=jnp.float32)

    @pl.when(k == pl.num_programs(3) - 1)
    def _finalize():
        h = acc_ref[...] + b_ref[...]                 # (Bt*tS, tN) + (1, tN)
        h = h.reshape(Bt, tS, -1)
        o_ref[...] = (h * g_ref[...]).astype(o_ref.dtype)   # gate bcast over S


def _squash_kernel_single_k(x_ref, wT_ref, b_ref, g_ref, o_ref):
    # Whole reduction fits one K block: no scratch accumulator needed.
    Bt, tS, tK = x_ref.shape
    x2 = x_ref[...].reshape(Bt * tS, tK)
    h = jnp.dot(x2, wT_ref[...], preferred_element_type=jnp.float32) + b_ref[...]
    h = h.reshape(Bt, tS, -1)
    o_ref[...] = (h * g_ref[...]).astype(o_ref.dtype)


# ------------------------ parameter preparation ----------------------------

class SquashLinearParams(NamedTuple):
    wT_p: jax.Array        # (dim_in_p, dim_out_p), compute dtype, pre-transposed + padded
    b_p: jax.Array         # (1, dim_out_p), f32
    wh: jax.Array          # (dim_out, 1+dim_c), f32
    bh: jax.Array          # (dim_out,), f32
    dim_in: int
    dim_out: int
    dim_in_p: int
    dim_out_p: int
    tK: int
    tN: int
    compute_dtype: Any


def prepare_squash_linear_params(w, b, wh, bh, *, compute_dtype=jnp.bfloat16, hw=None):
    """Hoist weight transpose / padding out of the per-call path."""
    hw = hw or _hw_params()
    dim_out, dim_in = w.shape

    # --- K (dim_in) tiling ---------------------------------------------------
    if dim_in % _LANE == 0:
        dim_in_p = dim_in
        tK = min(dim_in, hw["tk_cap"])
        while dim_in_p % tK != 0:
            tK -= _LANE                      # stays a positive multiple of 128
    elif dim_in <= 2048:
        # Single full-width K block (block == full array dim is legal);
        # avoids materializing a K-padded copy of x on every call.
        dim_in_p, tK = dim_in, dim_in
    else:
        tK = hw["tk_cap"]
        dim_in_p = _round_up(dim_in, tK)

    # --- N (dim_out) tiling: lane-dense stores -------------------------------
    dim_out_p = _round_up(dim_out, _LANE)
    tN = min(dim_out_p, hw["tn_cap"])
    dim_out_p = _round_up(dim_out_p, tN)

    wT = jnp.transpose(w).astype(compute_dtype)          # (dim_in, dim_out)
    wT_p = jnp.pad(wT, ((0, dim_in_p - dim_in), (0, dim_out_p - dim_out)))
    b_p = jnp.pad(b.astype(jnp.float32).reshape(1, -1),
                  ((0, 0), (0, dim_out_p - dim_out)))

    return SquashLinearParams(
        wT_p=wT_p, b_p=b_p,
        wh=wh.astype(jnp.float32), bh=bh.astype(jnp.float32),
        dim_in=dim_in, dim_out=dim_out,
        dim_in_p=dim_in_p, dim_out_p=dim_out_p,
        tK=tK, tN=tN, compute_dtype=compute_dtype)


# ------------------------------ forward call --------------------------------

def squash_linear_apply(params: SquashLinearParams, context, x, *, hw=None):
    hw = hw or _hw_params()

    squeeze_seq = x.ndim == 2
    if squeeze_seq:
        x = x[:, None, :]
    B, S, dim_in = x.shape
    assert dim_in == params.dim_in, "dim_in mismatch with prepared params"
    out_dtype = x.dtype
    compute_dtype = params.compute_dtype
    x_it = jnp.dtype(compute_dtype).itemsize
    o_it = jnp.dtype(out_dtype).itemsize

    # ---- gate in XLA (M=1 matmul is not worth an MXU pass in the kernel) ----
    gate = jax.nn.sigmoid(
        jnp.dot(context.astype(jnp.float32), params.wh.T) + params.bh)   # (B, dim_out)

    # ------------------------------ tiling -----------------------------------
    tK, tN = params.tK, params.tN
    dim_in_p, dim_out_p = params.dim_in_p, params.dim_out_p
    k_tiles = dim_in_p // tK

    sub = 16 if x_it == 2 else 8            # bf16 packs 2 rows per sublane
    S_p = _round_up(S, sub)
    tS = min(S_p, hw["m_cap"])
    S_p = _round_up(S_p, tS)

    # Pack batch elements per program so M = Bt*tS is a healthy MXU row count.
    Bt = 1
    for d in range(B, 0, -1):
        if B % d == 0 and d * tS <= hw["m_cap"]:
            Bt = d
            break

    in_buffers = 3 if (hw["extra_in_buffers"] and k_tiles >= 4) else 2

    def footprint(Bt_, tS_, tN_):
        m = Bt_ * tS_
        fb = in_buffers * (m * tK * x_it + tK * tN_ * x_it)     # x + wT buffers
        fb += 2 * m * tN_ * o_it                                # out double buffer
        if k_tiles > 1:
            fb += m * tN_ * 4                                   # f32 accumulator
        fb += 2 * (tN_ * 4 + Bt_ * tN_ * 4)                     # bias + gate buffers
        return fb

    budget = int(hw["vmem_limit"] * 0.9)
    while footprint(Bt, tS, tN) > budget:
        if tN >= 256 and (tN // 2) % _LANE == 0 and dim_out_p % (tN // 2) == 0:
            tN //= 2
        elif Bt > 1:
            Bt = max((d for d in range(1, Bt) if B % d == 0), default=1)
        elif tS > sub:
            new_tS = max(sub, (tS // 2) // sub * sub)
            if new_tS == tS:
                break
            tS = new_tS
            S_p = _round_up(_round_up(S, sub), tS)
        else:
            break

    # v7x: make sure both TensorCores get at least one parallel block.
    if hw["want_multi_block"]:
        if (B // Bt) * (S_p // tS) * (dim_out_p // tN) < 2:
            if tN >= 256 and (tN // 2) % _LANE == 0 and dim_out_p % (tN // 2) == 0:
                tN //= 2
            elif tS >= 2 * sub:
                tS = (tS // 2) // sub * sub
                S_p = _round_up(_round_up(S, sub), tS)
            elif Bt > 1:
                Bt = max((d for d in range(1, Bt) if B % d == 0), default=1)

    # ------------------------------- padding ---------------------------------
    xp = x.astype(compute_dtype)
    if S_p != S or dim_in_p != dim_in:
        # K pad (when present) must be zero-filled for correctness; S pad rows
        # are sliced off below.
        xp = jnp.pad(xp, ((0, 0), (0, S_p - S), (0, dim_in_p - dim_in)))
    gp = jnp.pad(gate, ((0, 0), (0, dim_out_p - params.dim_out)))[:, None, :]  # (B,1,Np)

    # --------------------------- grid / specs --------------------------------
    if k_tiles == 1:
        grid = (B // Bt, S_p // tS, dim_out_p // tN)
        kernel = _squash_kernel_single_k
        in_specs = [
            pl.BlockSpec((Bt, tS, tK), lambda bi, si, ni: (bi, si, 0)),
            pl.BlockSpec((tK, tN), lambda bi, si, ni: (0, ni)),
            pl.BlockSpec((1, tN), lambda bi, si, ni: (0, ni)),
            pl.BlockSpec((Bt, 1, tN), lambda bi, si, ni: (bi, 0, ni)),
        ]
        out_specs = pl.BlockSpec((Bt, tS, tN), lambda bi, si, ni: (bi, si, ni))
        scratch_shapes = []
        dims = ("parallel", "parallel", "parallel")
    else:
        grid = (B // Bt, S_p // tS, dim_out_p // tN, k_tiles)
        kernel = _squash_kernel_acc
        if in_buffers > 2:
            x_spec = pl.BlockSpec((Bt, tS, tK), lambda bi, si, ni, ki: (bi, si, ki),
                                  pipeline_mode=pl.Buffered(in_buffers))
            w_spec = pl.BlockSpec((tK, tN), lambda bi, si, ni, ki: (ki, ni),
                                  pipeline_mode=pl.Buffered(in_buffers))
        else:
            x_spec = pl.BlockSpec((Bt, tS, tK), lambda bi, si, ni, ki: (bi, si, ki))
            w_spec = pl.BlockSpec((tK, tN), lambda bi, si, ni, ki: (ki, ni))
        in_specs = [
            x_spec,
            w_spec,
            pl.BlockSpec((1, tN), lambda bi, si, ni, ki: (0, ni)),
            pl.BlockSpec((Bt, 1, tN), lambda bi, si, ni, ki: (bi, 0, ni)),
        ]
        out_specs = pl.BlockSpec((Bt, tS, tN), lambda bi, si, ni, ki: (bi, si, ni))
        scratch_shapes = [pltpu.VMEM((Bt * tS, tN), jnp.float32)]
        dims = ("parallel", "parallel", "parallel", "arbitrary")

    # ----------------------------- cost model --------------------------------
    n_m_tiles = (B // Bt) * (S_p // tS)
    n_n_tiles = dim_out_p // tN
    flops = 2 * B * S_p * dim_in_p * dim_out_p
    bytes_accessed = (
        B * S_p * dim_in_p * x_it * n_n_tiles           # x re-read once per N tile
        + dim_in_p * dim_out_p * x_it * n_m_tiles       # W re-streamed per M tile
        + B * S_p * dim_out_p * o_it                    # output
        + B * dim_out_p * 4 + dim_out_p * 4)            # gate + bias

    out_p = pl.pallas_call(
        kernel,
        out_shape=jax.ShapeDtypeStruct((B, S_p, dim_out_p), out_dtype),
        grid_spec=pltpu.PrefetchScalarGridSpec(
            num_scalar_prefetch=0,
            grid=grid,
            in_specs=in_specs,
            out_specs=out_specs,
            scratch_shapes=scratch_shapes),
        compiler_params=pltpu.CompilerParams(
            dimension_semantics=dims,
            vmem_limit_bytes=hw["vmem_limit"]),
        cost_estimate=pl.CostEstimate(
            flops=flops, transcendentals=0, bytes_accessed=bytes_accessed),
    )(xp, params.wT_p, params.b_p, gp)

    out = out_p[:, :S, :params.dim_out]
    if squeeze_seq:
        out = out[:, 0, :]
    return out


def squash_linear(context, x, w, b, wh, bh, *, compute_dtype=jnp.bfloat16):
    """Convenience one-shot path (prepares padded weights on the fly)."""
    hw = _hw_params()
    params = prepare_squash_linear_params(w, b, wh, bh,
                                          compute_dtype=compute_dtype, hw=hw)
    return squash_linear_apply(params, context, x, hw=hw)


# --------------------------------- test -------------------------------------

if __name__ == "__main__":
    # Small shapes consistent with the module's forward (3-D x path).
    B, S, dim_in, dim_out, dim_c = 2, 8, 32, 32, 4
    dim_ctx = 1 + dim_c

    key = jax.random.PRNGKey(0)
    k_w, k_b, k_wh, k_bh, k_x, k_ctx = jax.random.split(key, 6)

    # Deterministic parameter init mimicking nn.Linear's U(-1/sqrt(fan_in), ...)
    bound = 1.0 / (dim_in ** 0.5)
    w = jax.random.uniform(k_w, (dim_out, dim_in), jnp.float32, -bound, bound)
    b = jax.random.uniform(k_b, (dim_out,), jnp.float32, -bound, bound)

    bound_h = 1.0 / (dim_ctx ** 0.5)
    wh = jax.random.uniform(k_wh, (dim_out, dim_ctx), jnp.float32, -bound_h, bound_h)
    bh = jax.random.uniform(k_bh, (dim_out,), jnp.float32, -bound_h, bound_h)

    x = jax.random.normal(k_x, (B, S, dim_in), jnp.float32)
    context = jax.random.normal(k_ctx, (B, dim_ctx), jnp.float32)

    # Pure-JAX reference of the PyTorch forward.
    ref_gate = jax.nn.sigmoid(context @ wh.T + bh)[:, None, :]   # unsqueeze(1)
    ref = (x @ w.T + b) * ref_gate

    hw = _hw_params()

    # Preferred ODE-solver path: prepare weights once, apply many times (bf16 MXU).
    params_bf16 = prepare_squash_linear_params(w, b, wh, bh,
                                               compute_dtype=jnp.bfloat16, hw=hw)
    out_bf16 = jax.block_until_ready(
        squash_linear_apply(params_bf16, context, x, hw=hw))
    assert out_bf16.shape == (B, S, dim_out)
    assert jnp.allclose(out_bf16, ref, atol=3e-2, rtol=3e-2), "bf16 mismatch vs reference"

    # f32-compute path: tight semantic check.
    out_f32 = jax.block_until_ready(
        squash_linear(context, x, w, b, wh, bh, compute_dtype=jnp.float32))
    assert out_f32.shape == (B, S, dim_out)
    assert jnp.allclose(out_f32, ref, atol=1e-5, rtol=1e-5), "f32 mismatch vs reference"

    # 2-D x path (module's x.dim() == 2 branch: gate not unsqueezed).
    out_2d = jax.block_until_ready(
        squash_linear_apply(params_bf16, context, x[:, 0, :], hw=hw))
    assert out_2d.shape == (B, dim_out)
    assert jnp.allclose(out_2d, ref[:, 0, :], atol=3e-2, rtol=3e-2), "2-D path mismatch"

    print("KERNEL_OK")
</pallas_src>

<mosaic_0001>
module attributes {stable_mosaic.version = 11 : i64} {
  func.func @_squash_kernel_single_k(%arg0: i32, %arg1: i32, %arg2: i32, %arg3: memref<1x16x32xbf16, #tpu.memory_space<vmem>>, %arg4: memref<32x128xbf16, #tpu.memory_space<vmem>>, %arg5: memref<1x128xf32, #tpu.memory_space<vmem>>, %arg6: memref<1x1x128xf32, #tpu.memory_space<vmem>>, %arg7: memref<1x16x128xf32, #tpu.memory_space<vmem>>) attributes {dimension_semantics = [#tpu.dimension_semantics<parallel>, #tpu.dimension_semantics<parallel>, #tpu.dimension_semantics<parallel>], iteration_bounds = array<i64: 2, 1, 1>, scalar_prefetch = 0 : i64, scratch_operands = 0 : i64, tpu.core_type = #tpu.core_type<tc>, window_params = [{transform_indices = @transform_0, window_bounds = array<i64: 1, 16, 32>}, {transform_indices = @transform_1, window_bounds = array<i64: 32, 128>}, {transform_indices = @transform_2, window_bounds = array<i64: 1, 128>}, {transform_indices = @transform_3, window_bounds = array<i64: 1, 1, 128>}, {transform_indices = @transform_4, window_bounds = array<i64: 1, 16, 128>}]} {
    %c0 = arith.constant 0 : index
    %c0_0 = arith.constant 0 : index
    %c0_1 = arith.constant 0 : index
    %0 = vector.load %arg3[%c0, %c0_0, %c0_1] : memref<1x16x32xbf16, #tpu.memory_space<vmem>>, vector<1x16x32xbf16>
    %1 = vector.shape_cast %0 : vector<1x16x32xbf16> to vector<16x32xbf16>
    %c0_2 = arith.constant 0 : index
    %c0_3 = arith.constant 0 : index
    %2 = vector.load %arg4[%c0_2, %c0_3] : memref<32x128xbf16, #tpu.memory_space<vmem>>, vector<32x128xbf16>
    %cst = arith.constant dense<0.000000e+00> : vector<16x128xf32>
    %3 = tpu.matmul %1, %2, %cst {dimension_numbers = #tpu.dot_dimension_numbers<[1], [0], [0], [1], [0, 0, 1, 1], [], []>} : vector<16x32xbf16>, vector<32x128xbf16>, vector<16x128xf32> -> vector<16x128xf32>
    %c0_4 = arith.constant 0 : index
    %c0_5 = arith.constant 0 : index
    %4 = vector.load %arg5[%c0_4, %c0_5] : memref<1x128xf32, #tpu.memory_space<vmem>>, vector<1x128xf32>
    %5 = vector.broadcast %4 : vector<1x128xf32> to vector<16x128xf32>
    %6 = arith.addf %3, %5 : vector<16x128xf32>
    %7 = vector.shape_cast %6 : vector<16x128xf32> to vector<1x16x128xf32>
    %c0_6 = arith.constant 0 : index
    %c0_7 = arith.constant 0 : index
    %c0_8 = arith.constant 0 : index
    %8 = vector.load %arg6[%c0_6, %c0_7, %c0_8] : memref<1x1x128xf32, #tpu.memory_space<vmem>>, vector<1x1x128xf32>
    %9 = vector.broadcast %8 : vector<1x1x128xf32> to vector<1x16x128xf32>
    %10 = arith.mulf %7, %9 : vector<1x16x128xf32>
    %c0_9 = arith.constant 0 : index
    %c0_10 = arith.constant 0 : index
    %c0_11 = arith.constant 0 : index
    %11 = vector.load %arg7[%c0_9, %c0_10, %c0_11] : memref<1x16x128xf32, #tpu.memory_space<vmem>>, vector<1x16x128xf32>
    tpu.vector_store %arg7[%c0_9, %c0_10, %c0_11], %10 {strides = array<i32>} : memref<1x16x128xf32, #tpu.memory_space<vmem>>, vector<1x16x128xf32>,
    return
  }
  func.func @transform_0(%arg0: i32, %arg1: i32, %arg2: i32) -> (i32, i32, i32) {
    %c0_i32 = arith.constant 0 : i32
    %c0_i32_0 = arith.constant 0 : i32
    return %arg0, %arg1, %c0_i32 : i32, i32, i32
  }
  func.func @transform_1(%arg0: i32, %arg1: i32, %arg2: i32) -> (i32, i32) {
    %c0_i32 = arith.constant 0 : i32
    %c0_i32_0 = arith.constant 0 : i32
    return %c0_i32, %arg2 : i32, i32
  }
  func.func @transform_2(%arg0: i32, %arg1: i32, %arg2: i32) -> (i32, i32) {
    %c0_i32 = arith.constant 0 : i32
    %c0_i32_0 = arith.constant 0 : i32
    return %c0_i32, %arg2 : i32, i32
  }
  func.func @transform_3(%arg0: i32, %arg1: i32, %arg2: i32) -> (i32, i32, i32) {
    %c0_i32 = arith.constant 0 : i32
    %c0_i32_0 = arith.constant 0 : i32
    return %arg0, %c0_i32, %arg2 : i32, i32, i32
  }
  func.func @transform_4(%arg0: i32, %arg1: i32, %arg2: i32) -> (i32, i32, i32) {
    %c0_i32 = arith.constant 0 : i32
    return %arg0, %arg1, %arg2 : i32, i32, i32
  }
}

</mosaic_0001>

<bundles_post_ra>
// kernel: tpu_custom_call.1
= control target key start
LH: loop header
LB: loop body
LE: loop exit
PB: predicated region body
PF: predicated region fallthrough
CT: control target
= control target key end

     0   :  { %s1003_s0 = inlined_call_operand.hbm [shape: bf16[2,16,32], index: 0, kind: input, shape index: {}]   ;;  %s1004_s1 = inlined_call_operand.hbm [shape: bf16[32,128], index: 1, kind: input, shape index: {}]   ;;  %s1005_s2 = inlined_call_operand.hbm [shape: f32[1,128], index: 2, kind: input, shape index: {}]   ;;  %s1006_s3 = inlined_call_operand.vmem [shape: f32[2,1,128], index: 3, kind: input, shape index: {}]   ;;  %s1007_s4 = inlined_call_operand.hbm [shape: f32[2,16,128], index: 4, kind: output, shape index: {}]  }
   0x1   :  { %1009 = sst [smem:[#allocation12_spill]] %s1004_s1 }
   0x2   :  { %9 = vsyncpa [#allocation3], 0 }
   0x3   :  { %11 = vsyncpa [#allocation3 + $0x1], 0 }
   0x4   :  { %12 = vsyncpa [#allocation6], 0 }
   0x5   :  { %13 = vsyncpa [#allocation4], 0 }
   0x6   :  { %15 = vsyncpa [#allocation4 + $0x1], 0  ;;  %s849_s15 = smov 0   ;;  %s851_s16 = smov 0  }
   0x7   :  { %s853_s17 = smov 0   ;;  %s855_s18 = smov 0  }
   0x8   :  { %s857_s19 = smov 0   ;;  %s859_s20 = smov 0  }
   0x9 LB: > { %s514_s21 = sadd.s32 4294967295, %s816_s20   ;;  %s515_s22 = sadd.s32 4294967294, %s816_s20   ;;  %s816_s20 = sphi %s859_s20, %s21_s20   ;;  %s812_s19 = sphi %s857_s19, %s1021_s19   ;;  %s808_s18 = sphi %s855_s18, %s1020_s18   ;;  %s804_s17 = sphi %s853_s17, %s1019_s17   ;;  %s800_s16 = sphi %s851_s16, %s1018_s16   ;;  %s796_s15 = sphi %s849_s15, %s1017_s15  }
   0xa   : > { %p62_p0 = scmp.ne.s32.totalorder %s800_s16, %s796_s15  ;;  %p883_p1 = scmp.eq.s32.totalorder %s514_s21, 0 }
   0xb   : > { %p176_p2 = scmp.eq.s32.totalorder %s515_s22, 1  ;;  %p516_p4 = scmp.ge.s32.totalorder %s816_s20, 1 }
   0xc   : > { %p889_p3 = por %p883_p1, %p62_p0  ;;  %p183_p6 = scmp.lt.s32.totalorder %s816_s20, 3 }
   0xd   : > { %p894_p5 = por %p176_p2, %p62_p0  ;;  %s1013_s1 = sld [smem:[#allocation12_spill]] }
   0xe   : > { %p902_p7 = pnand %p516_p4, %p183_p6  ;;  %s818_s30 = smov [#allocation5]  }
   0xf   : > { %s198_s5 = sshll.u32 %s818_s30, 4  ;;  %p519_p10 = scmp.ge.s32.totalorder %s816_s20, 2  ;;  %s199_s5 = int_to_ptr.vmem [resolvable:$true] %s198_s5 }
  0x10   : > { %p563_p8 = pneg %p902_p7  ;;  %s212_s8 = sshll.u32 %s1005_s2, 4  ;;  %s213_s8 = int_to_ptr.hbm [resolvable:$true] %s212_s8 }
  0x11   : > { %s1008_s9 = smov 64   ;;  %s820_s10 = smov 4  }
  0x12   : > { %p564_p9 = pnand %p563_p8, %p883_p1  ;;  %s821_s11 = smov [#allocation7]  }
  0x13   : > { %s196_s28 = sshll.u32 %s1013_s1, 4  ;;  %s214_s12 = sshll.u32 %s821_s11, 4  ;;  %s197_s28 = int_to_ptr.hbm [resolvable:$true] %s196_s28  ;;  %s215_s12 = int_to_ptr.vmem [resolvable:$true] %s214_s12 }
  0x14   : > { %566 = dma.hbm_to_vmem [thread:$0]  (!%p564_p9), %s197_s28, 256, %s199_s5, [#allocation6], %s1008_s9, %s1008_s9, %s820_s10  }
  0x15   : > { %569 = dma.hbm_to_vmem [thread:$0]  (!%p564_p9), %s213_s8, 16, %s215_s12, [#allocation6]  }
  0x16   : > { %p170_p11 = scmp.eq.s32.totalorder %s514_s21, 1  ;;  %s40_s13 = sadd.s32 1, %s812_s19 }
  0x17   : > { %p42_p12 = scmp.ge.s32.totalorder %s40_s13, 2  ;;  %s49_s14 = sadd.s32 1, %s804_s17 }
  0x18   : > { %p56_p13 = scmp.ne.s32.totalorder %s804_s17, %s800_s16  ;;  %p57_p0 = scmp.eq.s32.totalorder %s816_s20, 0 }
  0x19   : > { %s1023_s13 = smov (%p42_p12, %s40_s13), 0  ;;  %p580_p4 = scmp.lt.s32.totalorder %s816_s20, 2 }
  0x1a   : > { %p924_p2 = por %p170_p11, %p56_p13  ;;  %s44_s26 = ssub.s32 %s812_s19, %s1023_s13 }
  0x1b   : > { %s225_s27 = sand.u32 1, %s804_s17   ;;  %p47_p6 = scmp.eq.s32.totalorder %s44_s26, 0 }
  0x1c   : > { %p58_p8 = por %p57_p0, %p56_p13  ;;  %s520_s28 = sshll.u32 %s225_s27, 3 }
  0x1d   : > { %s546_s21 = sshll.u32 %s812_s19, 3  ;;  %s229_s11 = scalar_lea.vmem [#allocation2], %s520_s28 }
  0x1e   : > { %s934_s30 = scalar_select %p47_p6, %s804_s17, %s49_s14  }
  0x1f   : > { %s236_s7 = scalar_lea.hbm %s1003_s0, %s546_s21  ;;  %s239_s12 = sshll.u32 %s229_s11, 4  ;;  %s240_s12 = int_to_ptr.vmem [resolvable:$true] %s239_s12 }
  0x20   : > { %s237_s8 = sshll.u32 %s236_s7, 4  ;;  %p571_p9 = pnand %p580_p4, %p58_p8  ;;  %s238_s8 = int_to_ptr.hbm [resolvable:$true] %s237_s8 }
  0x21   : > { %s226_s9 = scalar_lea.sflag [#allocation3], %s225_s27  ;;  %s1016_s1 = smov 64  }
  0x22   : > { %573 = dma.hbm_to_vmem [thread:$0]  (!%p571_p9), %s238_s8, 128, %s240_s12, %s226_s9, %s1016_s1, %s1016_s1, %s820_s10  }
  0x23   : > { %260 = sbr.rel (%p902_p7) target bundleno = 193 (0xc1), region = 36  ;;  %s947_s14 = sand.u32 (!%p902_p7), 1, %s800_s16  }
  0x24   : > { %s524_s26 = sshll.u32 (!%p902_p7), %s947_s14, 3  ;;  %s263_s28 = scalar_lea.sflag (!%p902_p7), [#allocation3], %s947_s14 }
  0x25   : > { %s266_s21 = scalar_lea.vmem (!%p902_p7), [#allocation2], %s524_s26 }
  0x28   : > { %783 = dma.done.wait (%p889_p3), %s263_s28, 128  }
  0x29   : > { %785 = vsyncadd (%p889_p3), %s263_s28, 4294967168 }
  0x2a   : > { %787 = dma.done.wait (%p883_p1), [#allocation6], 272  }
  0x2b   : > { %789 = vsyncadd (%p883_p1), [#allocation6], 4294967024  ;;  %p309_p7 = scmp.lt.s32.totalorder %s808_s18, 1  ;;  %v549_v0 = vld [vmem:[#allocation5 + $0x8] sm:$0xff]  ;;  %v548_v1 = vld [vmem:[#allocation5] sm:$0xff]  ;;  %vm344_vm0 = vcmask 261120  }
  0x2c   : > { %354 = vmatpush.bf16.msra.mxu0 %v549_v0  ;;  %v547_v2 = vld [vmem:[%s266_s21] sm:$0xff]  ;;  %s527_s23 = sshll.u32 %s947_s14, 4  ;;  %s550_s24 = sshll.u32 %s808_s18, 4 }
  0x2d   : > { %s310_s1 = scalar_select %p309_p7, %s808_s18, 1  ;;  %v638_v3 = vld [vmem:[#allocation7] ss:$0 sm:$0xff] }
  0x2e   : > { %s385_s6 = scalar_lea.hbm %s1007_s4, %s550_s24  ;;  %s307_s7 = scalar_lea.vmem [#allocation8], %s527_s23 }
  0x2f   : > { %s314_s10 = scalar_lea.vmem %s1006_s3, %s310_s1  ;;  %s386_s8 = sshll.u32 %s307_s7, 4  ;;  %s387_s8 = int_to_ptr.vmem [resolvable:$true] %s386_s8 }
  0x30   : > { %355 = vmatpush.bf16.msra.mxu0 %v548_v1  ;;  %v639_v4 = vld [vmem:[%s314_s10] ss:$0 sm:$0xff]  ;;  %s388_s11 = sshll.u32 %s385_s6, 4  ;;  %s371_s12 = scalar_lea.sflag [#allocation4], %s947_s14  ;;  %s389_s11 = int_to_ptr.hbm [resolvable:$true] %s388_s11 }
  0x31   : > { %s744_s26 = sshra.s32 %s389_s11, 4  ;;  %s750_s1 = scalar_lea.hbm %s1007_s4, 32  ;;  %s745_s26 = int_to_ptr.hbm [resolvable:$true] %s744_s26 }
  0x32   : > { %s746_s18 = scalar_lea.hbm %s745_s26, 16  ;;  %p751_p12 = scmp.lt.s32.totalorder %s745_s26, %s1007_s4 }
  0x33   : > { %540 = vmatmul.msk.bf16.vlgmr.msra.gmra.mxu0 %vm344_vm0, %v547_v2  ;;  %p747_p1 = scmp.ne.s32.totalorder %s745_s26, %s746_s18  ;;  %p752_p13 = scmp.lt.s32.totalorder %s750_s1, %s746_s18 }
  0x35   : > { %p748_p3 = pnand %p747_p1, %p924_p2  ;;  %p753_p0 = por %p752_p13, %p751_p12 }
  0x37   : > { %p749_p11 = pneg %p748_p3 }
  0x39   : > { %p754_p4 = pnand %p753_p0, %p749_p11 }
  0xb0   : > { %v357_v5 = vpop.f32.mrf.mxu0 }
  0xb1   : > { %v358_v6 = vadd.f32 %v638_v3, %v357_v5 }
  0xb3   : > { %v366_v7 = vmul.f32 %v639_v4, %v358_v6 }
  0xb5   : > { %368 = vst [vmem:[%s307_s7] sm:$0xff] %v366_v7 }
  0xb8   : > { %v359_v8 = vpop.f32.mrf.mxu0 }
  0xb9   : > { %v360_v9 = vadd.f32 %v638_v3, %v359_v8 }
  0xbb   : > { %v367_v10 = vmul.f32 %v639_v4, %v360_v9 }
  0xbd   : > { %369 = vst [vmem:[%s307_s7 + $0x8] sm:$0xff] %v367_v10 }
  0xbe   : > { %757 = shalt.err (!%p754_p4)
}
  0xbf   : > { %s822_s14 = smov 128   ;;  %s823_s10 = smov 8  }
  0xc0   : > { %561 = dma.vmem_to_hbm [thread:$0]  (%p924_p2), %s387_s8, 256, %s389_s11, %s371_s12, %s822_s14, %s822_s14, %s823_s10  }
  0xc1 PF: > { %s403_s23 = sand.u32 1, %s796_s15   ;;  %p575_p6 = pnand %p519_p10, %p894_p5 }
  0xc2   : > { %s404_s24 = scalar_lea.sflag [#allocation4], %s403_s23 }
  0xc3   : > { %p576_p8 = pneg %p575_p6 }
  0xc5   : > { %791 = dma.done.wait (%p576_p8), %s404_s24, 256  }
  0xc6   : > { %793 = vsyncadd (%p576_p8), %s404_s24, 4294967040  ;;  %s21_s20 = sadd.s32 1, %s816_s20   ;;  %s1017_s15 = smov %s800_s16 }
  0xc7   : > { %p18_p9 = scmp.ge.s32.totalorder %s21_s20, 4   ;;  %s1018_s16 = smov %s804_s17 }
  0xc8   : > { %s1019_s17 = smov %s934_s30  ;;  %s1020_s18 = smov %s812_s19 }
  0xc9   : > { %s1021_s19 = smov %s1023_s13  ;;  %20 = sbr.rel (!%p18_p9) target bundleno = 9 (0x9), region = 94 }
  0xce   :  { %410 = vsyncpa [#allocation3], 1 }
  0xcf   :  { %412 = vsyncpa [#allocation3 + $0x1], 1 }
  0xd0   :  { %413 = vsyncpa [#allocation6], 1 }
  0xd1   :  { %414 = vsyncpa [#allocation4], 1 }
  0xd2   :  { %416 = vsyncpa [#allocation4 + $0x1], 1 }

</bundles_post_ra>
